<compile_context>
chip_gen: v7x
topology: tpu7x:2x2x1
jax: 0.10.0
libtpu: 0.0.40
codegen_flags: <defaults>
</compile_context>

<pallas_src>
import functools

import jax
import jax.numpy as jnp
from jax.experimental import pallas as pl
from jax.experimental.pallas import tpu as pltpu


# --------------------------- hardware-aware sizing ---------------------------
def _vmem_limit_bytes():
    """Generation-aware VMEM request (v7x has 64 MiB/TC, v5e/v6e have 128 MiB)."""
    cap = 128 * 1024 * 1024
    try:
        info = pltpu.get_tpu_info()
        cap = int(getattr(info, "vmem_capacity_bytes", cap)) or cap
    except Exception:
        pass
    return int(min(cap * 3 // 4, 100 * 1024 * 1024))       # always leave headroom


def _pick_tile_m(batch, hidden, depth):
    # Per-grid-step overhead (~0.35us) dwarfs MXU time at small H, so use big
    # row tiles when hidden is small; shrink as hidden grows (VMEM pressure).
    cap = 1024 if hidden <= 512 else (256 if hidden <= 2048 else 128)
    tile_m = 8
    for t in (1024, 512, 256, 128, 64, 32, 16, 8):
        if t <= cap and batch >= t:
            tile_m = t
            break
    # Bound worst-case padding (one partial tile per leaf group).
    n_leaves = 2 ** (depth - 1)
    while tile_m > 8 and n_leaves * tile_m > 2 * batch:
        tile_m //= 2
    return tile_m


def _pick_tile_n(hidden, vmem_limit):
    # (1, H, tile_n) bf16 weight window, triple-buffered; keep it well inside VMEM.
    assert hidden % 128 == 0, "tiled path assumes hidden is a multiple of 128"
    tile_n = hidden
    while tile_n > 128 and (3 * hidden * tile_n * 2 > vmem_limit // 4
                            or hidden % tile_n != 0):
        tile_n -= 128
    return tile_n


# ------------------ path A: all node weights VMEM-resident -------------------
def _resident_tree_kernel(node_idx_ref, valid_ref, x_ref, w_ref, b_ref, o_ref,
                          acc_ref, *, depth):
    t = pl.program_id(0)                 # token tile          (parallel)
    d = pl.program_id(1)                 # tree level          (innermost)

    @pl.when(valid_ref[t] != 0)          # skip all-padding slack tiles entirely
    def _():
        @pl.when(d == 0)
        def _():
            acc_ref[...] = x_ref[...].astype(jnp.float32)

        node = node_idx_ref[t * depth + d]          # packed tree-node id (SMEM)
        w = w_ref[node]                             # (H, H)  bf16, VMEM resident
        b = b_ref[node]                             # (1, H)  f32,  VMEM resident
        y = jnp.dot(acc_ref[...].astype(w_ref.dtype), w,
                    preferred_element_type=jnp.float32) + b

        @pl.when(d < depth - 1)
        def _():
            acc_ref[...] = jnp.maximum(y, 0.0)      # internal node: Linear + ReLU

        @pl.when(d == depth - 1)
        def _():
            o_ref[...] = y.astype(o_ref.dtype)      # leaf node: plain Linear


def _tree_forward_resident(x_padded, node_idx_flat, tile_valid, all_w, all_b,
                           *, depth, tile_m, vmem_limit):
    P, H = x_padded.shape
    n_tiles = P // tile_m
    kernel = functools.partial(_resident_tree_kernel, depth=depth)
    return pl.pallas_call(
        kernel,
        out_shape=jax.ShapeDtypeStruct((P, H), x_padded.dtype),
        grid_spec=pltpu.PrefetchScalarGridSpec(
            num_scalar_prefetch=2,                   # flat node ids + valid flags -> SMEM
            grid=(n_tiles, depth),
            in_specs=[
                pl.BlockSpec((tile_m, H), lambda t, d, nidx, valid: (t, 0)),
                pl.BlockSpec(memory_space=pltpu.MemorySpace.VMEM),  # all weights resident
                pl.BlockSpec(memory_space=pltpu.MemorySpace.VMEM),  # all biases  resident
            ],
            out_specs=pl.BlockSpec((tile_m, H), lambda t, d, nidx, valid: (t, 0)),
            scratch_shapes=[pltpu.VMEM((tile_m, H), jnp.float32)],  # resident activation
        ),
        compiler_params=pltpu.CompilerParams(
            dimension_semantics=("parallel", "arbitrary"),
            vmem_limit_bytes=vmem_limit,
        ),
    )(node_idx_flat, tile_valid, x_padded, all_w, all_b)


# --------- path B: large hidden -- gathered, N-tiled weight blocks -----------
def _tiled_tree_kernel(node_idx_ref, valid_ref, x_ref, w_ref, b_ref, o_ref,
                       acc_ref, *, depth, n_nblk, tile_n):
    t = pl.program_id(0)                 # token tile           (parallel)
    d = pl.program_id(1)                 # tree level
    n = pl.program_id(2)                 # output-feature block (innermost)
    src = d % 2                          # ping-pong buffer holding level-d input
    dst = 1 - src

    @pl.when(valid_ref[t] != 0)
    def _():
        @pl.when(jnp.logical_and(d == 0, n == 0))
        def _():
            for kb in range(n_nblk):     # scatter x into the chunked layout once
                acc_ref[0, kb] = x_ref[:, kb * tile_n:(kb + 1) * tile_n].astype(jnp.float32)

        tile_m = x_ref.shape[0]
        y = jnp.zeros((tile_m, tile_n), jnp.float32)
        for kb in range(n_nblk):         # full-K matmul from the chunked activations
            y = y + jnp.dot(acc_ref[src, kb].astype(w_ref.dtype),
                            w_ref[0, pl.ds(kb * tile_n, tile_n), :],
                            preferred_element_type=jnp.float32)
        y = y + b_ref[0]

        @pl.when(d < depth - 1)
        def _():
            acc_ref[dst, n] = jnp.maximum(y, 0.0)   # internal node: Linear + ReLU

        @pl.when(d == depth - 1)
        def _():
            o_ref[0, n] = y.astype(o_ref.dtype)     # leaf node: plain Linear


def _tree_forward_tiled(x_padded, node_idx_flat, tile_valid, all_w, all_b,
                        *, depth, tile_m, tile_n, vmem_limit):
    P, H = x_padded.shape
    n_tiles = P // tile_m
    n_nblk = H // tile_n
    kernel = functools.partial(_tiled_tree_kernel, depth=depth, n_nblk=n_nblk,
                               tile_n=tile_n)
    out4 = pl.pallas_call(
        kernel,
        out_shape=jax.ShapeDtypeStruct((n_tiles, n_nblk, tile_m, tile_n),
                                       x_padded.dtype),
        grid_spec=pltpu.PrefetchScalarGridSpec(
            num_scalar_prefetch=2,
            grid=(n_tiles, depth, n_nblk),
            in_specs=[
                pl.BlockSpec((tile_m, H), lambda t, d, n, nidx, valid: (t, 0)),
                pl.BlockSpec((1, H, tile_n),
                             lambda t, d, n, nidx, valid: (nidx[t * depth + d], 0, n),
                             pipeline_mode=pl.Buffered(3)),      # hide gather DMA
                pl.BlockSpec((1, 1, tile_n),
                             lambda t, d, n, nidx, valid: (nidx[t * depth + d], 0, n)),
            ],
            out_specs=pl.BlockSpec((1, n_nblk, tile_m, tile_n),
                                   lambda t, d, n, nidx, valid: (t, 0, 0, 0)),
            scratch_shapes=[pltpu.VMEM((2, n_nblk, tile_m, tile_n), jnp.float32)],
        ),
        compiler_params=pltpu.CompilerParams(
            dimension_semantics=("parallel", "arbitrary", "arbitrary"),
            vmem_limit_bytes=vmem_limit,
        ),
    )(node_idx_flat, tile_valid, x_padded, all_w, all_b)
    # (tile, nblk, row, col) -> row-major (padded tokens, hidden)
    return jnp.transpose(out4, (0, 2, 1, 3)).reshape(P, H)


# --------------------------------- model glue ---------------------------------
class BinaryTreeGoEPallas:
    def __init__(self, depth, hidden, key):
        assert depth >= 2
        self.depth = depth
        self.hidden = hidden
        keys = jax.random.split(key, 2 * depth + 1)
        bound = 1.0 / (hidden ** 0.5)
        w_list, b_list = [], []
        for d in range(depth):
            n_e = 2 ** d
            w = jax.random.uniform(keys[2 * d], (n_e, hidden, hidden),
                                   jnp.float32, -bound, bound)       # (out, in)
            b = jax.random.uniform(keys[2 * d + 1], (n_e, hidden),
                                   jnp.float32, -bound, bound)
            w_list.append(jnp.swapaxes(w, -1, -2))                    # -> (in, out)
            b_list.append(b)
        # Pack every tree node: node id = 2**d - 1 + expert_at_level_d.
        self.all_w = jnp.concatenate(w_list, axis=0).astype(jnp.bfloat16)   # (n_nodes, H, H)
        self.all_b = jnp.concatenate(b_list, axis=0)[:, None, :]            # (n_nodes, 1, H) f32
        # Linear-threshold router (concrete PretrainedBinaryTreeRouter).
        self.router_w = jax.random.normal(keys[-1], (hidden, depth - 1), jnp.float32)

    def get_path(self, x):
        # Router matmul stays in plain XLA (output width depth-1 << 128 lanes).
        return (x @ self.router_w > 0).astype(jnp.int32)

    def __call__(self, x, take_random_path=False, rng_key=None,
                 force_tiled=False, tile_n_override=None):
        depth, H = self.depth, self.hidden
        B = x.shape[0]
        G = 2 ** (depth - 1)                       # number of leaf experts
        tile_m = _pick_tile_m(B, H, depth)
        vmem_limit = _vmem_limit_bytes()

        if take_random_path:
            assert rng_key is not None, "take_random_path=True needs rng_key"
            bits = jax.random.randint(rng_key, (B, depth - 1), 0, 2, dtype=jnp.int32)
        else:
            bits = self.get_path(x)                                          # (B, depth-1)

        pw = jnp.array([2 ** (depth - 2 - k) for k in range(depth - 1)], jnp.int32)
        leaf = jnp.sum(bits * pw[None, :], axis=1).astype(jnp.int32)         # (B,)

        # Sort tokens by leaf expert; the level-d expert is a bit prefix of the
        # leaf index, so one sort groups tokens for every level simultaneously.
        order = jnp.argsort(leaf)
        leaf_sorted = leaf[order]
        counts = jnp.bincount(leaf, length=G).astype(jnp.int32)
        tiles_per_group = (counts + tile_m - 1) // tile_m
        group_tile_start = jnp.concatenate(
            [jnp.zeros((1,), jnp.int32), jnp.cumsum(tiles_per_group)[:-1].astype(jnp.int32)])
        group_row_start = jnp.concatenate(
            [jnp.zeros((1,), jnp.int32), jnp.cumsum(counts)[:-1].astype(jnp.int32)])

        n_tiles = (B + tile_m - 1) // tile_m + G   # static worst case
        P = n_tiles * tile_m

        rank = jnp.arange(B, dtype=jnp.int32) - group_row_start[leaf_sorted]
        dest = group_tile_start[leaf_sorted] * tile_m + rank                 # padded row per token
        # TODO(synk): fold this pad/scatter + final unsort into the kernel via a
        # prefetched row-index DMA gather to avoid one extra HBM round-trip of x/y.
        x_padded = jnp.zeros((P, H), x.dtype).at[dest].set(x[order])

        # Flat per-(tile, level) node-id table + per-tile valid flag. Dead slack
        # tiles repeat the last live tile's node ids so the gathered weight block
        # index never changes on them (no extra weight DMA), and the valid flag
        # lets the kernel skip their compute entirely.
        n_used = jnp.sum(tiles_per_group).astype(jnp.int32)
        tile_ids = jnp.arange(n_tiles, dtype=jnp.int32)
        tile_valid = (tile_ids < n_used).astype(jnp.int32)
        tile_ids_eff = jnp.minimum(tile_ids, jnp.maximum(n_used - 1, 0))
        group_tile_end = jnp.cumsum(tiles_per_group).astype(jnp.int32)
        tile_group = jnp.searchsorted(group_tile_end, tile_ids_eff,
                                      side="right").astype(jnp.int32)
        shift = jnp.array([depth - 1 - d for d in range(depth)], jnp.int32)
        node_base = jnp.array([2 ** d - 1 for d in range(depth)], jnp.int32)
        expert = jnp.right_shift(tile_group[:, None], shift[None, :])        # (n_tiles, depth)
        node_idx_flat = (node_base[None, :] + expert).astype(jnp.int32).reshape(-1)

        weight_bytes = (self.all_w.size * self.all_w.dtype.itemsize
                        + self.all_b.size * self.all_b.dtype.itemsize)
        use_resident = (not force_tiled) and weight_bytes <= vmem_limit // 4

        if use_resident:
            y_padded = _tree_forward_resident(
                x_padded, node_idx_flat, tile_valid, self.all_w, self.all_b,
                depth=depth, tile_m=tile_m, vmem_limit=vmem_limit)
        else:
            tile_n = tile_n_override or _pick_tile_n(H, vmem_limit)
            y_padded = _tree_forward_tiled(
                x_padded, node_idx_flat, tile_valid, self.all_w, self.all_b,
                depth=depth, tile_m=tile_m, tile_n=tile_n, vmem_limit=vmem_limit)

        # Unsort / drop padding.
        return jnp.zeros((B, H), y_padded.dtype).at[order].set(y_padded[dest])


# ------------------------------- JAX reference --------------------------------
def reference_forward(model, x, bits):
    outs = []
    for i in range(x.shape[0]):
        y = x[i:i + 1].astype(jnp.float32)                 # (1, H)
        e = 0
        for d in range(model.depth):
            node = 2 ** d - 1 + e
            y = jnp.dot(y.astype(jnp.bfloat16), model.all_w[node],
                        preferred_element_type=jnp.float32) + model.all_b[node]
            if d < model.depth - 1:
                y = jnp.maximum(y, 0.0)
                e = e * 2 + int(bits[i, d])
        outs.append(y[0])
    return jnp.stack(outs)


if __name__ == "__main__":
    key = jax.random.PRNGKey(0)
    k1, k2, k3, k4 = jax.random.split(key, 4)

    # Test 1: small hidden -> fully VMEM-resident weight path.
    depth, hidden, batch = 3, 128, 8
    model = BinaryTreeGoEPallas(depth, hidden, k1)
    x = jax.random.normal(k2, (batch, hidden), jnp.float32)
    y = jax.block_until_ready(model(x))
    y_ref = reference_forward(model, x, model.get_path(x))
    assert y.shape == (batch, hidden)
    assert jnp.allclose(y, y_ref, atol=1e-2, rtol=1e-2), "resident path mismatch"

    # Test 2: exercise the gathered / N-tiled large-hidden path.
    depth2, hidden2, batch2 = 3, 256, 8
    model2 = BinaryTreeGoEPallas(depth2, hidden2, k3)
    x2 = jax.random.normal(k4, (batch2, hidden2), jnp.float32)
    y2 = jax.block_until_ready(model2(x2, force_tiled=True, tile_n_override=128))
    y2_ref = reference_forward(model2, x2, model2.get_path(x2))
    assert jnp.allclose(y2, y2_ref, atol=1e-2, rtol=1e-2), "tiled path mismatch"

    print("KERNEL_OK")
</pallas_src>

<mosaic_0001>
module attributes {stable_mosaic.version = 11 : i64} {
  func.func @_resident_tree_kernel(%arg0: i32, %arg1: i32, %arg2: memref<15xi32, #tpu.memory_space<smem>>, %arg3: memref<5xi32, #tpu.memory_space<smem>>, %arg4: memref<8x128xf32, #tpu.memory_space<vmem>>, %arg5: memref<7x128x128xbf16, #tpu.memory_space<vmem>>, %arg6: memref<7x1x128xf32, #tpu.memory_space<vmem>>, %arg7: memref<8x128xf32, #tpu.memory_space<vmem>>, %arg8: memref<8x128xf32, #tpu.memory_space<vmem>>) attributes {dimension_semantics = [#tpu.dimension_semantics<parallel>, #tpu.dimension_semantics<arbitrary>], iteration_bounds = array<i64: 5, 3>, scalar_prefetch = 2 : i64, scratch_operands = 1 : i64, tpu.core_type = #tpu.core_type<tc>, window_params = [{transform_indices = @transform_0, window_bounds = array<i64: 8, 128>}, {pipeline_mode = #tpu.pipeline_mode<synchronous>, transform_indices = @transform_1, window_bounds = array<i64: 7, 128, 128>}, {pipeline_mode = #tpu.pipeline_mode<synchronous>, transform_indices = @transform_2, window_bounds = array<i64: 7, 1, 128>}, {transform_indices = @transform_3, window_bounds = array<i64: 8, 128>}]} {
    %0 = arith.index_cast %arg0 : i32 to index
    %1 = memref.load %arg3[%0] : memref<5xi32, #tpu.memory_space<smem>>
    %c0_i32 = arith.constant 0 : i32
    %2 = arith.cmpi ne, %1, %c0_i32 : i32
    %3 = arith.extui %2 : i1 to i32
    %c0_i32_0 = arith.constant 0 : i32
    %4 = arith.cmpi ne, %3, %c0_i32_0 : i32
    scf.if %4 {
      %c0_i32_1 = arith.constant 0 : i32
      %5 = arith.cmpi eq, %arg1, %c0_i32_1 : i32
      %6 = arith.extui %5 : i1 to i32
      %c0_i32_2 = arith.constant 0 : i32
      %7 = arith.cmpi ne, %6, %c0_i32_2 : i32
      scf.if %7 {
        %c0_11 = arith.constant 0 : index
        %c0_12 = arith.constant 0 : index
        %29 = vector.load %arg4[%c0_11, %c0_12] : memref<8x128xf32, #tpu.memory_space<vmem>>, vector<8x128xf32>
        %c0_13 = arith.constant 0 : index
        %c0_14 = arith.constant 0 : index
        %30 = vector.load %arg8[%c0_13, %c0_14] : memref<8x128xf32, #tpu.memory_space<vmem>>, vector<8x128xf32>
        tpu.vector_store %arg8[%c0_13, %c0_14], %29 {strides = array<i32>} : memref<8x128xf32, #tpu.memory_space<vmem>>, vector<8x128xf32>,
      } else {
      }
      %c3_i32 = arith.constant 3 : i32
      %8 = arith.muli %arg0, %c3_i32 : i32
      %9 = arith.addi %8, %arg1 : i32
      %10 = arith.index_cast %9 : i32 to index
      %11 = memref.load %arg2[%10] : memref<15xi32, #tpu.memory_space<smem>>
      %12 = arith.index_cast %11 : i32 to index
      %c0 = arith.constant 0 : index
      %c0_3 = arith.constant 0 : index
      %13 = vector.load %arg5[%12, %c0, %c0_3] : memref<7x128x128xbf16, #tpu.memory_space<vmem>>, vector<1x128x128xbf16>
      %14 = vector.shape_cast %13 : vector<1x128x128xbf16> to vector<128x128xbf16>
      %15 = arith.index_cast %11 : i32 to index
      %c0_4 = arith.constant 0 : index
      %c0_5 = arith.constant 0 : index
      %16 = vector.load %arg6[%15, %c0_4, %c0_5] : memref<7x1x128xf32, #tpu.memory_space<vmem>>, vector<1x1x128xf32>
      %17 = vector.shape_cast %16 : vector<1x1x128xf32> to vector<1x128xf32>
      %c0_6 = arith.constant 0 : index
      %c0_7 = arith.constant 0 : index
      %18 = vector.load %arg8[%c0_6, %c0_7] : memref<8x128xf32, #tpu.memory_space<vmem>>, vector<8x128xf32>
      %19 = arith.truncf %18 : vector<8x128xf32> to vector<8x128xbf16>
      %cst = arith.constant dense<0.000000e+00> : vector<8x128xf32>
      %20 = tpu.matmul %19, %14, %cst {dimension_numbers = #tpu.dot_dimension_numbers<[1], [0], [0], [1], [0, 0, 1, 1], [], []>} : vector<8x128xbf16>, vector<128x128xbf16>, vector<8x128xf32> -> vector<8x128xf32>
      %21 = vector.broadcast %17 : vector<1x128xf32> to vector<8x128xf32>
      %22 = arith.addf %20, %21 : vector<8x128xf32>
      %c2_i32 = arith.constant 2 : i32
      %23 = arith.cmpi slt, %arg1, %c2_i32 : i32
      %24 = arith.extui %23 : i1 to i32
      %c0_i32_8 = arith.constant 0 : i32
      %25 = arith.cmpi ne, %24, %c0_i32_8 : i32
      scf.if %25 {
        %cst_11 = arith.constant 0.000000e+00 : f32
        %29 = vector.broadcast %cst_11 : f32 to vector<8x128xf32>
        %30 = arith.maximumf %22, %29 : vector<8x128xf32>
        %c0_12 = arith.constant 0 : index
        %c0_13 = arith.constant 0 : index
        %31 = vector.load %arg8[%c0_12, %c0_13] : memref<8x128xf32, #tpu.memory_space<vmem>>, vector<8x128xf32>
        tpu.vector_store %arg8[%c0_12, %c0_13], %30 {strides = array<i32>} : memref<8x128xf32, #tpu.memory_space<vmem>>, vector<8x128xf32>,
      } else {
      }
      %c2_i32_9 = arith.constant 2 : i32
      %26 = arith.cmpi eq, %arg1, %c2_i32_9 : i32
      %27 = arith.extui %26 : i1 to i32
      %c0_i32_10 = arith.constant 0 : i32
      %28 = arith.cmpi ne, %27, %c0_i32_10 : i32
      scf.if %28 {
        %c0_11 = arith.constant 0 : index
        %c0_12 = arith.constant 0 : index
        %29 = vector.load %arg7[%c0_11, %c0_12] : memref<8x128xf32, #tpu.memory_space<vmem>>, vector<8x128xf32>
        tpu.vector_store %arg7[%c0_11, %c0_12], %22 {strides = array<i32>} : memref<8x128xf32, #tpu.memory_space<vmem>>, vector<8x128xf32>,
      } else {
      }
    } else {
    }
    return
  }
  func.func @transform_0(%arg0: i32, %arg1: i32, %arg2: memref<15xi32, #tpu.memory_space<smem>>, %arg3: memref<5xi32, #tpu.memory_space<smem>>) -> (i32, i32) {
    %c0_i32 = arith.constant 0 : i32
    %c0_i32_0 = arith.constant 0 : i32
    return %arg0, %c0_i32 : i32, i32
  }
  func.func @transform_1(%arg0: i32, %arg1: i32, %arg2: memref<15xi32, #tpu.memory_space<smem>>, %arg3: memref<5xi32, #tpu.memory_space<smem>>) -> (i32, i32, i32) {
    %c0_i32 = arith.constant 0 : i32
    %c0_i32_0 = arith.constant 0 : i32
    %c0_i32_1 = arith.constant 0 : i32
    %c0_i32_2 = arith.constant 0 : i32
    return %c0_i32, %c0_i32_0, %c0_i32_1 : i32, i32, i32
  }
  func.func @transform_2(%arg0: i32, %arg1: i32, %arg2: memref<15xi32, #tpu.memory_space<smem>>, %arg3: memref<5xi32, #tpu.memory_space<smem>>) -> (i32, i32, i32) {
    %c0_i32 = arith.constant 0 : i32
    %c0_i32_0 = arith.constant 0 : i32
    %c0_i32_1 = arith.constant 0 : i32
    %c0_i32_2 = arith.constant 0 : i32
    return %c0_i32, %c0_i32_0, %c0_i32_1 : i32, i32, i32
  }
  func.func @transform_3(%arg0: i32, %arg1: i32, %arg2: memref<15xi32, #tpu.memory_space<smem>>, %arg3: memref<5xi32, #tpu.memory_space<smem>>) -> (i32, i32) {
    %c0_i32 = arith.constant 0 : i32
    %c0_i32_0 = arith.constant 0 : i32
    return %arg0, %c0_i32 : i32, i32
  }
}

</mosaic_0001>

<bundles_post_ra>
// kernel: tpu_custom_call.1
= control target key start
LH: loop header
LB: loop body
LE: loop exit
PB: predicated region body
PF: predicated region fallthrough
CT: control target
= control target key end

     0   :  { %s1224_s0 = inlined_call_operand.hbm [shape: s32[15], index: 0, kind: input, shape index: {}]   ;;  %s1225_s2 = inlined_call_operand.hbm [shape: f32[40,128], index: 2, kind: input, shape index: {}]   ;;  %s1226_s3 = inlined_call_operand.hbm [shape: bf16[7,128,128], index: 3, kind: input, shape index: {}]   ;;  %s1227_s4 = inlined_call_operand.hbm [shape: f32[7,1,128], index: 4, kind: input, shape index: {}]   ;;  %s1228_s5 = inlined_call_operand.hbm [shape: f32[40,128], index: 5, kind: output, shape index: {}]   ;;  %s1229_s1 = inlined_call_operand.hbm [shape: s32[5], index: 1, kind: input, shape index: {}]  }
   0x1   :  { %1234 = sst [smem:[#allocation17_spill]] %s1226_s3  ;;  %s672_s20 = scalar_lea.hbm %s1224_s0, 16 }
   0x2   :  { %p673_p0 = scmp.ne.s32.totalorder %s1224_s0, %s672_s20  ;;  %p676_p1 = scmp.lt.u32.totalorder %s672_s20, %s1224_s0 }
   0x4   :  { %p678_p2 = pnand %p676_p1, %p673_p0 }
   0x6   :  { %681 = shalt.err (!%p678_p2)  }
   0x7   :  { %s884_s25 = smov [#allocation4]   ;;  %s682_s30 = scalar_lea.hbm %s1229_s1, 16 }
   0x8   :  { %11 = dma.hbm_to_smem %s1224_s0, 16, %s884_s25, [#allocation3] }
   0x9   :  { %p683_p3 = scmp.ne.s32.totalorder %s1229_s1, %s682_s30  ;;  %p686_p4 = scmp.lt.u32.totalorder %s682_s30, %s1229_s1 }
   0xb   :  { %p688_p5 = pnand %p686_p4, %p683_p3 }
   0xd   :  { %691 = shalt.err (!%p688_p5)  }
   0xe   :  { %s885_s10 = smov [#allocation5]  }
   0xf   :  { %13 = dma.hbm_to_smem %s1229_s1, 16, %s885_s10, [#allocation3] }
  0x10   :  { %838 = dma.done.wait [#allocation3], 32 }
  0x11   :  { %839 = vsyncadd [#allocation3], 4294967264 }
  0x12   :  { %15 = sfence }
  0x13   :  { %16 = vsyncpa [#allocation7], 0 }
  0x14   :  { %18 = vsyncpa [#allocation7 + $0x1], 0 }
  0x15   :  { %19 = vsyncpa [#allocation10], 0 }
  0x16   :  { %20 = vsyncpa [#allocation8], 0 }
  0x17   :  { %22 = vsyncpa [#allocation8 + $0x1], 0  ;;  %s950_s0 = smov 0   ;;  %s952_s13 = smov 0  }
  0x18   :  { %s954_s14 = smov 0   ;;  %s956_s15 = smov 0  }
  0x19   :  { %s958_s16 = smov 0   ;;  %s960_s17 = smov 0  }
  0x1a   :  { %s962_s1 = smov 0   ;;  %s964_s18 = smov 0  }
  0x1b LB: > { %s495_s19 = sadd.s32 4294967295, %s882_s18   ;;  %s496_s20 = sadd.s32 4294967294, %s882_s18   ;;  %s882_s18 = sphi %s964_s18, %s28_s18   ;;  %s878_s1 = sphi %s962_s1, %s1256_s1   ;;  %s874_s17 = sphi %s960_s17, %s1255_s17   ;;  %s870_s16 = sphi %s958_s16, %s1254_s16   ;;  %s866_s15 = sphi %s956_s15, %s1253_s15   ;;  %s862_s14 = sphi %s954_s14, %s1252_s14   ;;  %s858_s13 = sphi %s952_s13, %s1251_s13   ;;  %s854_s0 = sphi %s950_s0, %s1250_s0  }
  0x1c   : > { %p60_p6 = scmp.ne.s32.totalorder %s858_s13, %s854_s0  ;;  %p994_p7 = scmp.eq.s32.totalorder %s495_s19, 0 }
  0x1d   : > { %p998_p8 = scmp.eq.s32.totalorder %s495_s19, 14  ;;  %p132_p9 = scmp.eq.s32.totalorder %s496_s20, 14 }
  0x1e   : > { %s1235_s21 = scalar_select %p994_p7, 1, 0 }
  0x1f   : > { %s1236_s22 = scalar_select %p998_p8, 1, 0 }
  0x20   : > { %p1004_p10 = por %p994_p7, %p60_p6  ;;  %p497_p11 = scmp.ge.s32.totalorder %s882_s18, 1 }
  0x21   : > { %p1009_p12 = por %p132_p9, %p60_p6  ;;  %p139_p13 = scmp.lt.s32.totalorder %s882_s18, 16 }
  0x22   : > { %s1237_s23 = scalar_select %p1004_p10, 1, 0 }
  0x23   : > { %s1238_s24 = scalar_select %p1009_p12, 1, 0 }
  0x24   : > { %p1014_p0 = pnand %p497_p11, %p139_p13  ;;  %s886_s26 = smov [#allocation9]  }
  0x25   : > { %s151_s27 = sshll.u32 %s886_s26, 4  ;;  %s887_s29 = smov [#allocation11]   ;;  %s152_s27 = int_to_ptr.vmem [resolvable:$true] %s151_s27 }
  0x26   : > { %s1239_s25 = scalar_select %p1014_p0, 1, 0 }
  0x27   : > { %p569_p1 = pneg %p1014_p0  ;;  %s164_s30 = sshll.u32 %s887_s29, 4  ;;  %s1026_s30 = int_to_ptr.vmem [resolvable:$true] %s164_s30 }
  0x28   : > { %s1241_s3 = sld [smem:[#allocation17_spill]] }
  0x29   : > { %p1022_p2 = pnand %p569_p1, %p994_p7 }
  0x2b   : > { %p694_p4 = pneg %p1022_p2 }
  0x2e   : > { %s692_s8 = scalar_lea.hbm %s1241_s3, 7168 }
  0x2f   : > { %p693_p3 = scmp.ne.s32.totalorder %s1241_s3, %s692_s8  ;;  %p699_p9 = scmp.lt.u32.totalorder %s692_s8, %s1241_s3 }
  0x31   : > { %p695_p5 = pnand %p694_p4, %p693_p3 }
  0x33   : > { %p696_p6 = pneg %p695_p5 }
  0x35   : > { %p701_p11 = pnand %p699_p9, %p696_p6 }
  0x37   : > { %704 = shalt.err (!%p701_p11)
}
  0x38   : > { %s705_s19 = scalar_lea.vmem %s152_s27, 7168  ;;  %p713_p7 = scmp.lt.s32.totalorder %s152_s27, %s152_s27 }
  0x39   : > { %p706_p13 = scmp.ne.s32.totalorder %s152_s27, %s705_s19  ;;  %p714_p10 = scmp.lt.s32.totalorder %s705_s19, %s705_s19 }
  0x3b   : > { %p708_p1 = pnand %p706_p13, %p694_p4  ;;  %p715_p0 = por %p714_p10, %p713_p7 }
  0x3d   : > { %p709_p12 = pneg %p708_p1 }
  0x3f   : > { %p716_p8 = pnand %p715_p0, %p709_p12 }
  0x41   : > { %719 = shalt.err (!%p716_p8)
}
  0x42   : > { %s888_s20 = smov 64   ;;  %s889_s26 = smov 4  }
  0x43   : > { %572 = dma.hbm_to_vmem [thread:$0]  (!%p1022_p2), %s1241_s3, 7168, %s152_s27, [#allocation10], %s888_s20, %s888_s20, %s889_s26  }
  0x44   : > { %s720_s9 = scalar_lea.hbm %s1227_s4, 112 }
  0x45   : > { %p721_p3 = scmp.ne.s32.totalorder %s1227_s4, %s720_s9  ;;  %p727_p10 = scmp.lt.u32.totalorder %s720_s9, %s1227_s4 }
  0x47   : > { %p723_p7 = pnand %p721_p3, %p694_p4 }
  0x49   : > { %p724_p8 = pneg %p723_p7 }
  0x4b   : > { %p729_p12 = pnand %p727_p10, %p724_p8 }
  0x4d   : > { %732 = shalt.err (!%p729_p12)
}
  0x4e   : > { %s733_s27 = scalar_lea.vmem %s1026_s30, 112  ;;  %s740_s20 = scalar_lea.vmem %s1026_s30, 128 }
  0x4f   : > { %p734_p0 = scmp.ne.s32.totalorder %s1026_s30, %s733_s27  ;;  %p741_p9 = scmp.lt.s32.totalorder %s1026_s30, %s1026_s30 }
  0x50   : > { %p742_p11 = scmp.lt.s32.totalorder %s740_s20, %s733_s27 }
  0x51   : > { %p736_p5 = pnand %p734_p0, %p694_p4 }
  0x52   : > { %p743_p13 = por %p742_p11, %p741_p9 }
  0x53   : > { %p737_p6 = pneg %p736_p5 }
  0x55   : > { %p744_p1 = pnand %p743_p13, %p737_p6 }
  0x57   : > { %747 = shalt.err (!%p744_p1)
}
  0x58   : > { %s890_s26 = smov 16   ;;  %s891_s29 = smov 1  }
  0x59   : > { %575 = dma.hbm_to_vmem [thread:$0]  (!%p1022_p2), %s1227_s4, 112, %s1026_s30, [#allocation10], %s890_s26, %s890_s26, %s891_s29  }
  0x5a   : > { %s37_s8 = sadd.s32 1, %s874_s17  ;;  %s40_s9 = sadd.s32 1, %s878_s1 }
  0x5b   : > { %p38_p4 = scmp.ge.s32.totalorder %s37_s8, 3  ;;  %s47_s10 = sadd.s32 1, %s862_s14 }
  0x5c   : > { %p54_p3 = scmp.ne.s32.totalorder %s862_s14, %s858_s13  ;;  %p55_p7 = scmp.eq.s32.totalorder %s882_s18, 0 }
  0x5d   : > { %s1258_s8 = smov (%p38_p4, %s37_s8), 0  ;;  %s1260_s9 = smov (!%p38_p4, %s40_s9), %s878_s1 }
  0x5e   : > { %p1085_p8 = por %p55_p7, %p54_p3  ;;  %p1243_p10 = scmp.ne.s32.totalorder %s1236_s22, 0 }
  0x5f   : > { %p42_p2 = scmp.ge.s32.totalorder %s1260_s9, 5  ;;  %p586_p0 = scmp.lt.s32.totalorder %s882_s18, 15 }
  0x60   : > { %p1091_p12 = por %p1243_p10, %p54_p3  ;;  %s178_s30 = sand.u32 1, %s862_s14  }
  0x61   : > { %s502_s12 = sshll.u32 %s878_s1, 7  ;;  %s1262_s9 = smov (%p42_p2, %s1260_s9), 0 }
  0x62   : > { %s501_s19 = sshll.u32 %s178_s30, 3  ;;  %s44_s27 = ssub.s32 %s878_s1, %s1262_s9 }
  0x63   : > { %p45_p5 = scmp.eq.s32.totalorder %s44_s27, 0  ;;  %s1105_s29 = scalar_lea.hbm %s1225_s2, %s502_s12 }
  0x64   : > { %s182_s22 = scalar_lea.vmem [#allocation6], %s501_s19  ;;  %p1109_p6 = pnand %p586_p0, %p1085_p8 }
  0x65   : > { %s189_s6 = sshll.u32 %s182_s22, 4  ;;  %s179_s27 = scalar_lea.sflag [#allocation7], %s178_s30  ;;  %s1116_s6 = int_to_ptr.vmem [resolvable:$true] %s189_s6 }
  0x66   : > { %s1114_s3 = scalar_select %p45_p5, %s862_s14, %s47_s10  }
  0x67   : > { %s748_s12 = scalar_lea.hbm %s1105_s29, 128  ;;  %p750_p11 = pneg %p1109_p6 }
  0x68   : > { %p749_p9 = scmp.ne.s32.totalorder %s1105_s29, %s748_s12  ;;  %s753_s20 = scalar_lea.hbm %s1225_s2, 640 }
  0x69   : > { %p754_p4 = scmp.lt.u32.totalorder %s1105_s29, %s1225_s2  ;;  %p755_p3 = scmp.lt.u32.totalorder %s753_s20, %s748_s12 }
  0x6a   : > { %p751_p13 = pnand %p750_p11, %p749_p9  ;;  %p757_p8 = scmp.lt.u32.totalorder %s748_s12, %s1105_s29 }
  0x6b   : > { %p756_p7 = por %p755_p3, %p754_p4 }
  0x6c   : > { %p752_p1 = pneg %p751_p13 }
  0x6d   : > { %p758_p10 = por %p757_p8, %p756_p7 }
  0x6f   : > { %p759_p2 = pnand %p758_p10, %p752_p1 }
  0x71   : > { %762 = shalt.err (!%p759_p2)
}
  0x72   : > { %s763_s10 = scalar_lea.vmem %s1116_s6, 128  ;;  %s892_s30 = smov [#allocation6]  }
  0x73   : > { %p764_p0 = scmp.ne.s32.totalorder %s1116_s6, %s763_s10  ;;  %s768_s11 = sshll.u32 %s892_s30, 4  ;;  %s769_s11 = int_to_ptr.vmem [resolvable:$false] %s768_s11 }
  0x74   : > { %s770_s19 = scalar_lea.vmem %s769_s11, 256  ;;  %p771_p13 = scmp.lt.s32.totalorder %s1116_s6, %s769_s11 }
  0x75   : > { %p766_p5 = pnand %p764_p0, %p750_p11  ;;  %p772_p4 = scmp.lt.s32.totalorder %s770_s19, %s763_s10 }
  0x77   : > { %p767_p9 = pneg %p766_p5  ;;  %p773_p3 = por %p772_p4, %p771_p13 }
  0x79   : > { %p774_p7 = pnand %p773_p3, %p767_p9 }
  0x7b   : > { %777 = shalt.err (!%p774_p7)
}
  0x7c   : > { %579 = dma.hbm_to_vmem [thread:$0]  (!%p1109_p6), %s1105_s29, 128, %s1116_s6, %s179_s27  }
  0x7d   : > { %p1246_p1 = scmp.ne.s32.totalorder %s1239_s25, 0 }
  0x7e   : > { %s1146_s12 = sand.u32 (!%p1246_p1), 1, %s858_s13   ;;  %p1247_p11 = scmp.ne.s32.totalorder (!%p1246_p1), %s1237_s23, 0 }
  0x7f   : > { %198 = sbr.rel (%p1246_p1) target bundleno = 453 (0x1c5), region = 32  ;;  %s504_s20 = sshll.u32 (!%p1246_p1), %s1146_s12, 3 }
  0x80   : > { %s201_s26 = scalar_lea.sflag (!%p1246_p1), [#allocation7], %s1146_s12  ;;  %s204_s22 = scalar_lea.vmem (!%p1246_p1), [#allocation6], %s504_s20 }
  0x86   : > { %841 = dma.done.wait (%p1247_p11), %s201_s26, 128  }
  0x87   : > { %843 = vsyncadd (%p1247_p11), %s201_s26, 4294967168  ;;  %p1248_p8 = scmp.ne.s32.totalorder %s1235_s21, 0 }
  0x89   : > { %845 = dma.done.wait (%p1248_p8), [#allocation10], 7280  }
  0x8a   : > { %847 = vsyncadd (%p1248_p8), [#allocation10], 4294960016  ;;  %s236_s25 = sld [smem:[#allocation5 + %s870_s16]]  ;;  %s1159_s29 = scalar_lea.vmem [#allocation12], %s504_s20 }
  0x90   : > { %p508_p6 = scmp.eq.s32.totalorder %s236_s25, 0 }
  0x91   : > { %p509_p10 = scmp.ne.s32.totalorder (!%p508_p6), %s866_s15, 0 }
  0x92   : > { %240 = sbr.rel (%p508_p6) target bundleno = 429 (0x1ad), region = 48 }
  0x99   : > { %244 = sbr.rel (%p509_p10) target bundleno = 160 (0xa0), region = 52  ;;  %v245_v0 = vld [vmem:[%s204_s22] sm:$0xff] (!%p509_p10) }
  0x9a   : > { %246 = vst [vmem:[#allocation2] sm:$0xff] (!%p509_p10), %v245_v0 }
  0xa0 PF: > { %s247_s23 = smul.u32 3, %s870_s16  ;;  %v893_v1 = vmov 0.0   ;;  %vm894_vm0 = vmmov 0   ;;  %p521_p2 = scmp.ge.s32.totalorder %s866_s15, 2 }
  0xa1   : > { %537 = vmatprep.subr.bf16.mxu0 %v893_v1  ;;  %553 = vmatprep.mubr.msk.bf16.mxu0 %vm894_vm0, %v893_v1  ;;  %v271_v10 = vld [vmem:[#allocation2] sm:$0xff] }
  0xa2   : > { %s248_s21 = sadd.s32 %s866_s15, %s247_s23  ;;  %v272_v11 = vpack.c.bf16 %v271_v10, %v271_v10 }
  0xa3   : > { %s1164_s6 = sld [smem:[#allocation4 + %s248_s21]] }
  0xa9   : > { %s527_s7 = sshll.u32 %s1164_s6, 6  ;;  %s269_s10 = scalar_lea.vmem [#allocation11], %s1164_s6 }
  0xaa   : > { %s252_s27 = scalar_lea.vmem [#allocation9], %s527_s7  ;;  %v512_v12 = vld [vmem:[%s269_s10] ss:$0 sm:$0xff] }
  0xab   : > { %v664_v2 = vld [vmem:[%s252_s27] sm:$0xff]   ;;  %v665_v3 = vld [vmem:[%s252_s27 + $0x8] sm:$0xff]   ;;  %v666_v4 = vld [vmem:[%s252_s27 + $0x10] sm:$0xff]  }
  0xac   : > { %538 = vmatpush3.bf16.msra.mxu0 %v664_v2  ;;  %v667_v5 = vld [vmem:[%s252_s27 + $0x18] sm:$0xff]   ;;  %v668_v6 = vld [vmem:[%s252_s27 + $0x20] sm:$0xff]   ;;  %v669_v7 = vld [vmem:[%s252_s27 + $0x28] sm:$0xff]  }
  0xad   : > { %539 = vmatprep.subr.bf16.mxu0 %v893_v1  ;;  %v670_v8 = vld [vmem:[%s252_s27 + $0x30] sm:$0xff]   ;;  %v671_v9 = vld [vmem:[%s252_s27 + $0x38] sm:$0xff]  }
  0xb0   : > { %540 = vmatpush3.bf16.msra.mxu0 %v665_v3 }
  0xb1   : > { %541 = vmatprep.subr.bf16.mxu0 %v893_v1 }
  0xb4   : > { %542 = vmatpush3.bf16.msra.mxu0 %v666_v4 }
  0xb5   : > { %543 = vmatprep.subr.bf16.mxu0 %v893_v1 }
  0xb8   : > { %544 = vmatpush3.bf16.msra.mxu0 %v667_v5 }
  0xb9   : > { %545 = vmatprep.subr.bf16.mxu0 %v893_v1 }
  0xbc   : > { %546 = vmatpush3.bf16.msra.mxu0 %v668_v6 }
  0xbd   : > { %547 = vmatprep.subr.bf16.mxu0 %v893_v1 }
  0xc0   : > { %548 = vmatpush3.bf16.msra.mxu0 %v669_v7 }
  0xc1   : > { %549 = vmatprep.subr.bf16.mxu0 %v893_v1 }
  0xc4   : > { %550 = vmatpush3.bf16.msra.mxu0 %v670_v8 }
  0xc5   : > { %551 = vmatprep.subr.bf16.mxu0 %v893_v1 }
  0xc8   : > { %552 = vmatpush3.bf16.msra.mxu0 %v671_v9 }
  0xcb   : > { %554 = vmatmul.mubr.bf16.vlgmr.msra.gmra.mrb[0].mxu0 %v272_v11 }
 0x19b   : > { %370 = sbr.rel (%p521_p2) target bundleno = 420 (0x1a4), region = 56 }
 0x19e   : > { %v361_v13 = vpop.f32.mrb[0].mxu0 }
 0x19f   : > { %v362_v14 = vadd.f32 %v512_v12, %v361_v13  ;;  %v555_v15 = vpop.f32.mrb[1].mxu0 }
 0x1a0   : > { %v364_v16 = vpop.f32.mrb[2].mxu0 }
 0x1a1   : > { %v556_v17 = vpop.f32.mrb[3].mxu0  ;;  %v371_v18 = vmax.f32 (!%p521_p2), %v362_v14, 0.0 }
 0x1a3   : > { %372 = vst [vmem:[#allocation2] sm:$0xff] %v371_v18 }
 0x1a4 PF: > { %p522_p0 = scmp.ne.s32.totalorder %s866_s15, 2 }
 0x1a5   : > { %377 = vst [vmem:[%s1159_s29] sm:$0xff] (!%p522_p0), %v362_v14 }
 0x1a6   : > { %376 = sbr.rel (%p522_p0) target bundleno = 429 (0x1ad), region = 60 }
 0x1ad PF: > { %s524_s30 = sshll.u32 %s870_s16, 7  ;;  %s392_s26 = sshll.u32 %s1159_s29, 4  ;;  %s393_s26 = int_to_ptr.vmem [resolvable:$true] %s392_s26 }
 0x1ae   : > { %s1175_s20 = scalar_lea.hbm %s1228_s5, %s524_s30  ;;  %s379_s22 = scalar_lea.sflag [#allocation8], %s1146_s12 }
 0x1af   : > { %s778_s25 = scalar_lea.vmem %s393_s26, 128  ;;  %s895_s15 = smov [#allocation12]  }
 0x1b0   : > { %p779_p5 = scmp.ne.s32.totalorder %s393_s26, %s778_s25  ;;  %s782_s23 = sshll.u32 %s895_s15, 4  ;;  %s783_s23 = int_to_ptr.vmem [resolvable:$false] %s782_s23 }
 0x1b1   : > { %s784_s21 = scalar_lea.vmem %s783_s23, 256  ;;  %p785_p4 = scmp.lt.s32.totalorder %s393_s26, %s783_s23 }
 0x1b2   : > { %p780_p9 = pnand %p779_p5, %p1091_p12  ;;  %p786_p3 = scmp.lt.s32.totalorder %s784_s21, %s778_s25 }
 0x1b4   : > { %p781_p13 = pneg %p780_p9  ;;  %p787_p7 = por %p786_p3, %p785_p4 }
 0x1b6   : > { %p788_p1 = pnand %p787_p7, %p781_p13 }
 0x1b8   : > { %791 = shalt.err (!%p788_p1)
}
 0x1b9   : > { %s792_s16 = scalar_lea.hbm %s1175_s20, 128  ;;  %s796_s6 = scalar_lea.hbm %s1228_s5, 640 }
 0x1ba   : > { %p793_p11 = scmp.ne.s32.totalorder %s1175_s20, %s792_s16  ;;  %p797_p10 = scmp.lt.u32.totalorder %s1175_s20, %s1228_s5 }
 0x1bb   : > { %p798_p2 = scmp.lt.u32.totalorder %s796_s6, %s792_s16  ;;  %p800_p5 = scmp.lt.u32.totalorder %s792_s16, %s1175_s20 }
 0x1bc   : > { %p794_p8 = pnand %p793_p11, %p1091_p12 }
 0x1bd   : > { %p799_p0 = por %p798_p2, %p797_p10 }
 0x1be   : > { %p795_p6 = pneg %p794_p8 }
 0x1bf   : > { %p801_p9 = por %p800_p5, %p799_p0 }
 0x1c1   : > { %p802_p13 = pnand %p801_p9, %p795_p6 }
 0x1c3   : > { %805 = shalt.err (!%p802_p13)
}
 0x1c4   : > { %567 = dma.vmem_to_hbm [thread:$0]  (%p1091_p12), %s393_s26, 128, %s1175_s20, %s379_s22  }
 0x1c5 PF: > { %p589_p4 = scmp.ge.s32.totalorder %s882_s18, 2  ;;  %s404_s10 = sand.u32 1, %s854_s0  }
 0x1c6   : > { %p1249_p3 = scmp.ne.s32.totalorder %s1238_s24, 0  ;;  %s405_s30 = scalar_lea.sflag [#allocation8], %s404_s10 }
 0x1c8   : > { %p581_p7 = pnand %p589_p4, %p1249_p3 }
 0x1ca   : > { %849 = dma.done.wait (!%p581_p7), %s405_s30, 128  }
 0x1cb   : > { %851 = vsyncadd (!%p581_p7), %s405_s30, 4294967168  ;;  %s28_s18 = sadd.s32 1, %s882_s18   ;;  %s1250_s0 = smov %s858_s13 }
 0x1cc   : > { %p25_p1 = scmp.ge.s32.totalorder %s28_s18, 17   ;;  %s1251_s13 = smov %s862_s14 }
 0x1cd   : > { %s1252_s14 = smov %s1114_s3  ;;  %s1253_s15 = smov %s874_s17 }
 0x1ce   : > { %s1254_s16 = smov %s878_s1  ;;  %s1255_s17 = smov %s1258_s8 }
 0x1cf   : > { %s1256_s1 = smov %s1262_s9  ;;  %27 = sbr.rel (!%p25_p1) target bundleno = 27 (0x1b), region = 103 }
 0x1d6   :  { %410 = vsyncpa [#allocation7], 1 }
 0x1d7   :  { %412 = vsyncpa [#allocation7 + $0x1], 1 }
 0x1d8   :  { %413 = vsyncpa [#allocation10], 1 }
 0x1d9   :  { %414 = vsyncpa [#allocation8], 1 }
 0x1da   :  { %416 = vsyncpa [#allocation8 + $0x1], 1 }

</bundles_post_ra>
